<compile_context>
chip_gen: v7x
topology: tpu7x:2x2x1
jax: 0.10.0
libtpu: 0.0.40
codegen_flags: <defaults>
</compile_context>

<pallas_src>
import math

import jax
import jax.numpy as jnp
from jax.experimental import pallas as pl
from jax.experimental.pallas import tpu as pltpu

_MIB = 1024 * 1024
_NEG_BIG = -1e30  # finite "minus infinity" used for vocab padding / scratch init


def _round_up(n, m):
    return ((n + m - 1) // m) * m


def _cdiv(a, b):
    return (a + b - 1) // b


def _vmem_capacity_bytes():
    try:
        return int(pltpu.get_tpu_info().vmem_capacity_bytes)
    except Exception:
        return 64 * _MIB  # conservative (v7x per-core capacity)


def _block_spec(shape, index_map, *, buffers=None):
    """BlockSpec with an optional pipeline-depth hint (graceful fallback)."""
    if buffers is not None and hasattr(pl, "Buffered"):
        try:
            return pl.BlockSpec(shape, index_map, pipeline_mode=pl.Buffered(buffers))
        except TypeError:
            pass
    return pl.BlockSpec(shape, index_map)


# ----------------------------------------------------------------------------
# Kernels
# ----------------------------------------------------------------------------
def _generator_resident_kernel(x_ref, wt_ref, b_ref, o_ref):
    # x_ref:  (tm, d_model)   compute dtype (bf16 recommended)
    # wt_ref: (d_model, V)    compute dtype, single-buffered resident weight
    # b_ref:  (1, V)          f32 (pre-cast in wrapper)
    # o_ref:  (tm, V)         log-probabilities
    logits = jnp.dot(x_ref[...], wt_ref[...], preferred_element_type=jnp.float32)
    logits = logits + b_ref[...]
    m = jnp.max(logits, axis=-1, keepdims=True)
    shifted = logits - m
    lse = jnp.log(jnp.sum(jnp.exp(shifted), axis=-1, keepdims=True))
    o_ref[...] = (shifted - lse).astype(o_ref.dtype)


def _generator_tiled_kernel(x_ref, wt_ref, b_ref, o_ref, m_ref, l_ref):
    # grid = (token tiles, 2 passes, vocab tiles); pass/vocab axes sequential.
    # pass 0: stream vocab tiles, keep running max (m_ref) and rescaled
    #         sum-of-exp (l_ref) in VMEM scratch (online logsumexp).
    # pass 1: recompute the logits tile, emit logits - (m + log(l)).
    p = pl.program_id(1)
    k = pl.program_id(2)

    @pl.when((p == 0) & (k == 0))
    def _init():
        m_ref[...] = jnp.full(m_ref.shape, _NEG_BIG, m_ref.dtype)
        l_ref[...] = jnp.zeros(l_ref.shape, l_ref.dtype)

    logits = jnp.dot(x_ref[...], wt_ref[...], preferred_element_type=jnp.float32)
    logits = logits + b_ref[...]

    @pl.when(p == 0)
    def _accumulate():
        m_prev = m_ref[...]
        m_new = jnp.maximum(m_prev, jnp.max(logits, axis=-1, keepdims=True))
        l_ref[...] = l_ref[...] * jnp.exp(m_prev - m_new) + jnp.sum(
            jnp.exp(logits - m_new), axis=-1, keepdims=True)
        m_ref[...] = m_new

    @pl.when(p == 1)
    def _emit():
        lse = m_ref[...] + jnp.log(l_ref[...])
        o_ref[...] = (logits - lse).astype(o_ref.dtype)


# ----------------------------------------------------------------------------
# Wrapper
# ----------------------------------------------------------------------------
def generator(x, wt, b, *, tm=256, tv=None, compute_dtype=jnp.bfloat16,
              out_dtype=None, force_vocab_tiling=False):
    """log_softmax(x @ wt + b, axis=-1)  ==  GeneratorP.forward.

    x:  (batch, seq, d_model)
    wt: (d_model, vocab)  projection weight stored pre-transposed
                          (PyTorch nn.Linear weight is (vocab, d_model)).
    b:  (vocab,)
    """
    batch, seq, d_model = x.shape
    d_model_w, vocab = wt.shape
    assert d_model_w == d_model
    out_dtype = x.dtype if out_dtype is None else out_dtype
    cbytes = jnp.dtype(compute_dtype).itemsize
    obytes = jnp.dtype(out_dtype).itemsize

    M = batch * seq
    vmem_cap = _vmem_capacity_bytes()

    # --- token tiling --------------------------------------------------------
    tm = max(16, min(_round_up(tm, 16), _round_up(M, 16)))
    if M > 16 and _cdiv(M, tm) < 2:
        # keep >= 2 token programs so the 'parallel' axis can shard across
        # both TensorCores on v7x-class parts.
        tm = max(16, _round_up(_cdiv(M, 2), 16))
    Mp = _round_up(M, tm)
    nm = Mp // tm

    x2d = x.reshape(M, d_model).astype(compute_dtype)
    if Mp != M:
        x2d = jnp.pad(x2d, ((0, Mp - M), (0, 0)))
    wt_c = wt.astype(compute_dtype)
    b_f32 = b.astype(jnp.float32).reshape(1, vocab)

    # --- path selection: resident full-vocab weight vs streamed vocab tiles --
    vmem_resident = (
        d_model * vocab * cbytes + vocab * 4      # single-buffered weight + bias
        + 2 * tm * d_model * cbytes               # double-buffered x tiles
        + 2 * tm * vocab * obytes                 # double-buffered out tiles
        + 3 * tm * vocab * 4                      # f32 logits/shifted/exp temps
    )
    use_resident = (not force_vocab_tiling) and vmem_resident <= int(0.6 * vmem_cap)

    if use_resident:
        cost = pl.CostEstimate(
            flops=2 * Mp * d_model * vocab + 5 * Mp * vocab,
            transcendentals=Mp * vocab + Mp,
            bytes_accessed=(Mp * d_model * cbytes + d_model * vocab * cbytes
                            + vocab * 4 + Mp * vocab * obytes),
        )
        vmem_limit = min(int(0.9 * vmem_cap),
                         max(16 * _MIB, int(1.3 * vmem_resident)))
        out2d = pl.pallas_call(
            _generator_resident_kernel,
            out_shape=jax.ShapeDtypeStruct((Mp, vocab), out_dtype),
            grid_spec=pltpu.PrefetchScalarGridSpec(
                num_scalar_prefetch=0,
                grid=(nm,),
                in_specs=[
                    _block_spec((tm, d_model), lambda i: (i, 0)),
                    _block_spec((d_model, vocab), lambda i: (0, 0), buffers=1),
                    _block_spec((1, vocab), lambda i: (0, 0), buffers=1),
                ],
                out_specs=pl.BlockSpec((tm, vocab), lambda i: (i, 0)),
            ),
            compiler_params=pltpu.CompilerParams(
                dimension_semantics=("parallel",),
                vmem_limit_bytes=vmem_limit,
            ),
            cost_estimate=cost,
        )(x2d, wt_c, b_f32)
        return out2d[:M].reshape(batch, seq, vocab)

    # --- vocab-tiled path (online logsumexp, two passes over streamed W) -----
    if tv is None:
        # big vocab tiles on 128 MiB parts (v5e/v6e), smaller on ~64 MiB (v7x)
        tv = 4096 if vmem_cap >= 96 * _MIB else 2048
    tv = max(128, _round_up(tv, 128))
    tv = min(tv, _round_up(vocab, 128))
    Vp = _round_up(vocab, tv)
    nv = Vp // tv

    if Vp != vocab:
        wt_c = jnp.pad(wt_c, ((0, 0), (0, Vp - vocab)))
        # padded vocab columns get a hugely negative bias -> exp underflows to
        # zero, so they contribute nothing to the logsumexp; sliced off below.
        b_f32 = jnp.pad(b_f32, ((0, 0), (0, Vp - vocab)),
                        constant_values=_NEG_BIG)

    vmem_tiled = (
        2 * (d_model * tv * cbytes + tv * 4)      # double-buffered W / bias tiles
        + 2 * tm * d_model * cbytes               # double-buffered x tiles
        + 2 * tm * tv * obytes                    # double-buffered out tiles
        + 3 * tm * tv * 4                         # f32 per-tile temporaries
        + 2 * tm * 4                              # running max / sum scratch
    )
    vmem_limit = min(int(0.9 * vmem_cap), max(16 * _MIB, int(1.3 * vmem_tiled)))
    cost = pl.CostEstimate(
        flops=2 * (2 * Mp * d_model * Vp) + 6 * Mp * Vp,   # logits computed twice
        transcendentals=Mp * Vp + Mp,
        bytes_accessed=(Mp * d_model * cbytes
                        + 2 * nm * d_model * Vp * cbytes   # W restreamed per pass
                        + 2 * nm * Vp * 4
                        + Mp * Vp * obytes),
    )

    out2d = pl.pallas_call(
        _generator_tiled_kernel,
        out_shape=jax.ShapeDtypeStruct((Mp, Vp), out_dtype),
        grid_spec=pltpu.PrefetchScalarGridSpec(
            num_scalar_prefetch=0,
            grid=(nm, 2, nv),
            in_specs=[
                _block_spec((tm, d_model), lambda i, p, k: (i, 0)),
                _block_spec((d_model, tv), lambda i, p, k: (0, k)),
                _block_spec((1, tv), lambda i, p, k: (0, k)),
            ],
            # pass 0 parks the output on block (i, 0) (never flushed with
            # garbage: same index is rewritten at pass-1 k=0); pass 1 writes
            # every vocab block once.
            out_specs=pl.BlockSpec((tm, tv), lambda i, p, k: (i, k * p)),
            scratch_shapes=[
                pltpu.VMEM((tm, 1), jnp.float32),   # running max
                pltpu.VMEM((tm, 1), jnp.float32),   # running sum of exp
            ],
        ),
        compiler_params=pltpu.CompilerParams(
            dimension_semantics=("parallel", "arbitrary", "arbitrary"),
            vmem_limit_bytes=vmem_limit,
        ),
        cost_estimate=cost,
    )(x2d, wt_c, b_f32)
    return out2d[:M, :vocab].reshape(batch, seq, vocab)


def init_params(key, d_model, vocab, dtype=jnp.float32):
    """nn.Linear-style init U(-1/sqrt(d_model), +1/sqrt(d_model)).

    The weight is created directly in the matmul-friendly (d_model, vocab)
    layout (already transposed relative to PyTorch's (vocab, d_model)).
    """
    kw, kb = jax.random.split(key)
    bound = 1.0 / math.sqrt(d_model)
    wt = jax.random.uniform(kw, (d_model, vocab), dtype, -bound, bound)
    b = jax.random.uniform(kb, (vocab,), dtype, -bound, bound)
    return wt, b


if __name__ == "__main__":
    key = jax.random.PRNGKey(0)
    kx1, kp1, kx2, kp2 = jax.random.split(key, 4)

    def reference(x, wt, b):
        # matches the kernel's bf16-MXU / f32-accumulate arithmetic
        logits = jnp.dot(x.astype(jnp.bfloat16), wt.astype(jnp.bfloat16),
                         preferred_element_type=jnp.float32)
        logits = logits + b.astype(jnp.float32)
        return jax.nn.log_softmax(logits, axis=-1)

    # 1) small shapes -> resident-weight single-pass path
    batch, seq, d_model, vocab = 2, 8, 32, 32
    x = jax.random.normal(kx1, (batch, seq, d_model), jnp.float32)
    wt, b = init_params(kp1, d_model, vocab)
    out = jax.block_until_ready(generator(x, wt, b))
    assert out.shape == (batch, seq, vocab)
    assert jnp.allclose(out, reference(x, wt, b), atol=1e-3, rtol=1e-3), \
        "resident path mismatch vs bf16 reference"
    ref_f32 = jax.nn.log_softmax(x @ wt + b, axis=-1)       # exact module math
    assert jnp.allclose(out, ref_f32, atol=5e-2, rtol=5e-2), \
        "resident path drifted too far from f32 reference"

    # 2) vocab-tiled online-logsumexp path (multi-tile on both axes, with
    #    token- and vocab-padding exercised)
    batch2, seq2, d_model2, vocab2 = 2, 24, 64, 320
    x2 = jax.random.normal(kx2, (batch2, seq2, d_model2), jnp.float32)
    wt2, b2 = init_params(kp2, d_model2, vocab2)
    out2 = jax.block_until_ready(
        generator(x2, wt2, b2, tm=32, tv=128, force_vocab_tiling=True))
    assert out2.shape == (batch2, seq2, vocab2)
    assert jnp.allclose(out2, reference(x2, wt2, b2), atol=1e-3, rtol=1e-3), \
        "vocab-tiled path mismatch vs bf16 reference"

    print("KERNEL_OK")
</pallas_src>

<mosaic_0001>
module attributes {stable_mosaic.version = 11 : i64} {
  func.func @_generator_resident_kernel(%arg0: i32, %arg1: memref<16x32xbf16, #tpu.memory_space<vmem>>, %arg2: memref<32x32xbf16, #tpu.memory_space<vmem>>, %arg3: memref<1x32xf32, #tpu.memory_space<vmem>>, %arg4: memref<16x32xf32, #tpu.memory_space<vmem>>) attributes {dimension_semantics = [#tpu.dimension_semantics<parallel>], iteration_bounds = array<i64: 1>, scalar_prefetch = 0 : i64, scratch_operands = 0 : i64, tpu.core_type = #tpu.core_type<tc>, window_params = [{transform_indices = @transform_0, window_bounds = array<i64: 16, 32>}, {pipeline_mode = #tpu.pipeline_mode<synchronous>, transform_indices = @transform_1, window_bounds = array<i64: 32, 32>}, {pipeline_mode = #tpu.pipeline_mode<synchronous>, transform_indices = @transform_2, window_bounds = array<i64: 1, 32>}, {transform_indices = @transform_3, window_bounds = array<i64: 16, 32>}]} {
    %c0 = arith.constant 0 : index
    %c0_0 = arith.constant 0 : index
    %0 = vector.load %arg1[%c0, %c0_0] : memref<16x32xbf16, #tpu.memory_space<vmem>>, vector<16x32xbf16>
    %c0_1 = arith.constant 0 : index
    %c0_2 = arith.constant 0 : index
    %1 = vector.load %arg2[%c0_1, %c0_2] : memref<32x32xbf16, #tpu.memory_space<vmem>>, vector<32x32xbf16>
    %cst = arith.constant dense<0.000000e+00> : vector<16x32xf32>
    %2 = tpu.matmul %0, %1, %cst {dimension_numbers = #tpu.dot_dimension_numbers<[1], [0], [0], [1], [0, 0, 1, 1], [], []>} : vector<16x32xbf16>, vector<32x32xbf16>, vector<16x32xf32> -> vector<16x32xf32>
    %c0_3 = arith.constant 0 : index
    %c0_4 = arith.constant 0 : index
    %3 = vector.load %arg3[%c0_3, %c0_4] : memref<1x32xf32, #tpu.memory_space<vmem>>, vector<1x32xf32>
    %4 = vector.broadcast %3 : vector<1x32xf32> to vector<16x32xf32>
    %5 = arith.addf %2, %4 : vector<16x32xf32>
    %cst_5 = arith.constant dense<0xFF800000> : vector<16xf32>
    %6 = vector.multi_reduction <maximumf>, %5, %cst_5 [1] : vector<16x32xf32> to vector<16xf32>
    %7 = vector.shape_cast %6 : vector<16xf32> to vector<16x1xf32>
    %8 = vector.broadcast %7 : vector<16x1xf32> to vector<16x32xf32>
    %9 = arith.subf %5, %8 : vector<16x32xf32>
    %10 = math.exp %9 : vector<16x32xf32>
    %cst_6 = arith.constant dense<0.000000e+00> : vector<16xf32>
    %11 = vector.multi_reduction <add>, %10, %cst_6 [1] : vector<16x32xf32> to vector<16xf32>
    %12 = vector.shape_cast %11 : vector<16xf32> to vector<16x1xf32>
    %13 = math.log %12 : vector<16x1xf32>
    %14 = vector.broadcast %13 : vector<16x1xf32> to vector<16x32xf32>
    %15 = arith.subf %9, %14 : vector<16x32xf32>
    %c0_7 = arith.constant 0 : index
    %c0_8 = arith.constant 0 : index
    %16 = vector.load %arg4[%c0_7, %c0_8] : memref<16x32xf32, #tpu.memory_space<vmem>>, vector<16x32xf32>
    tpu.vector_store %arg4[%c0_7, %c0_8], %15 {strides = array<i32>} : memref<16x32xf32, #tpu.memory_space<vmem>>, vector<16x32xf32>,
    return
  }
  func.func @transform_0(%arg0: i32) -> (i32, i32) {
    %c0_i32 = arith.constant 0 : i32
    %c0_i32_0 = arith.constant 0 : i32
    return %arg0, %c0_i32 : i32, i32
  }
  func.func @transform_1(%arg0: i32) -> (i32, i32) {
    %c0_i32 = arith.constant 0 : i32
    %c0_i32_0 = arith.constant 0 : i32
    %c0_i32_1 = arith.constant 0 : i32
    return %c0_i32, %c0_i32_0 : i32, i32
  }
  func.func @transform_2(%arg0: i32) -> (i32, i32) {
    %c0_i32 = arith.constant 0 : i32
    %c0_i32_0 = arith.constant 0 : i32
    %c0_i32_1 = arith.constant 0 : i32
    return %c0_i32, %c0_i32_0 : i32, i32
  }
  func.func @transform_3(%arg0: i32) -> (i32, i32) {
    %c0_i32 = arith.constant 0 : i32
    %c0_i32_0 = arith.constant 0 : i32
    return %arg0, %c0_i32 : i32, i32
  }
}

</mosaic_0001>

<bundles_post_ra>
// kernel: tpu_custom_call.1
= control target key start
LH: loop header
LB: loop body
LE: loop exit
PB: predicated region body
PF: predicated region fallthrough
CT: control target
= control target key end

     0   :  { %8 = vsyncpa [#allocation3], 0  ;;  %s346_s0 = inlined_call_operand.hbm [shape: bf16[16,32], index: 0, kind: input, shape index: {}]   ;;  %s347_s1 = inlined_call_operand.hbm [shape: bf16[32,32], index: 1, kind: input, shape index: {}]   ;;  %s348_s2 = inlined_call_operand.vmem [shape: f32[1,32], index: 2, kind: input, shape index: {}]   ;;  %s349_s3 = inlined_call_operand.hbm [shape: f32[16,32], index: 3, kind: output, shape index: {}]  }
   0x1   :  { %9 = vsyncpa [#allocation6], 0 }
   0x2   :  { %10 = vsyncpa [#allocation4], 0  ;;  %s271_s12 = smov [#allocation2]   ;;  %s199_s16 = scalar_lea.hbm %s346_s0, 128 }
   0x3   :  { %s16_s13 = sshll.u32 %s271_s12, 4  ;;  %p200_p0 = scmp.ne.s32.totalorder %s346_s0, %s199_s16  ;;  %s17_s13 = int_to_ptr.vmem [resolvable:$true] %s16_s13 }
   0x4   :  { %p203_p1 = scmp.lt.u32.totalorder %s199_s16, %s346_s0 }
   0x6   :  { %p205_p2 = pnand %p203_p1, %p200_p0 }
   0x8   :  { %208 = shalt.err (!%p205_p2)
}
   0x9   :  { %s209_s21 = scalar_lea.vmem %s17_s13, 128  ;;  %p214_p4 = scmp.lt.s32.totalorder %s17_s13, %s17_s13 }
   0xa   :  { %p210_p3 = scmp.ne.s32.totalorder %s17_s13, %s209_s21  ;;  %p215_p5 = scmp.lt.s32.totalorder %s209_s21, %s209_s21 }
   0xc   :  { %p216_p6 = por %p215_p5, %p214_p4 }
   0xe   :  { %p217_p7 = pnand %p216_p6, %p210_p3 }
  0x10   :  { %220 = shalt.err (!%p217_p7)
}
  0x11   :  { %s272_s22 = smov 64   ;;  %s273_s23 = smov 4  }
  0x12   :  { %22 = dma.hbm_to_vmem [thread:$0]  %s346_s0, 128, %s17_s13, [#allocation3], %s272_s22, %s272_s22, %s273_s23  }
  0x13   :  { %s274_s26 = smov [#allocation5]   ;;  %s221_s30 = scalar_lea.hbm %s347_s1, 256 }
  0x14   :  { %s28_s27 = sshll.u32 %s274_s26, 4  ;;  %p222_p8 = scmp.ne.s32.totalorder %s347_s1, %s221_s30  ;;  %s29_s27 = int_to_ptr.vmem [resolvable:$true] %s28_s27 }
  0x15   :  { %p225_p9 = scmp.lt.u32.totalorder %s221_s30, %s347_s1 }
  0x17   :  { %p227_p10 = pnand %p225_p9, %p222_p8 }
  0x19   :  { %230 = shalt.err (!%p227_p10)
}
  0x1a   :  { %s231_s8 = scalar_lea.vmem %s29_s27, 256  ;;  %p236_p12 = scmp.lt.s32.totalorder %s29_s27, %s29_s27 }
  0x1b   :  { %p232_p11 = scmp.ne.s32.totalorder %s29_s27, %s231_s8  ;;  %p237_p13 = scmp.lt.s32.totalorder %s231_s8, %s231_s8 }
  0x1d   :  { %p238_p0 = por %p237_p13, %p236_p12 }
  0x1f   :  { %p239_p1 = pnand %p238_p0, %p232_p11 }
  0x21   :  { %242 = shalt.err (!%p239_p1)
}
  0x22   :  { %34 = dma.hbm_to_vmem [thread:$0]  %s347_s1, 256, %s29_s27, [#allocation6], %s272_s22, %s272_s22, %s273_s23  }
  0x23   :  { %265 = dma.done.wait [#allocation3], 128  }
  0x24   :  { %266 = vsyncadd [#allocation3], 4294967168 }
  0x25   :  { %267 = dma.done.wait [#allocation6], 256  }
  0x26   :  { %268 = vsyncadd [#allocation6], 4294967040  ;;  %v275_v0 = vmov 0.0   ;;  %vm276_vm0 = vmmov 0   ;;  %v188_v1 = vld [vmem:[#allocation5] sm:$0xff]   ;;  %v189_v2 = vld [vmem:[#allocation5 + $0x8] sm:$0xff]  }
  0x27   :  { %171 = vmatprep.subr.bf16.mxu0 %v275_v0  ;;  %175 = vmatprep.mubr.msk.bf16.mxu0 %vm276_vm0, %v275_v0  ;;  %v190_v3 = vld [vmem:[#allocation2] sm:$0xff]   ;;  %vm74_vm1 = vcmask 261120   ;;  %s277_s1 = smov [#allocation7]  }
  0x28   :  { %172 = vmatpush3.bf16.msra.mxu0 %v188_v1  ;;  %v163_v4 = vld [vmem:[%s348_s2] ss:$0 sm:$0xff]  ;;  %s150_s2 = sshll.u32 %s277_s1, 4  ;;  %s151_s2 = int_to_ptr.vmem [resolvable:$true] %s150_s2 }
  0x29   :  { %173 = vmatprep.subr.bf16.mxu0 %v275_v0  ;;  %s243_s12 = scalar_lea.vmem %s151_s2, 256  ;;  %p248_p3 = scmp.lt.s32.totalorder %s151_s2, %s151_s2 }
  0x2a   :  { %p244_p2 = scmp.ne.s32.totalorder %s151_s2, %s243_s12  ;;  %p249_p4 = scmp.lt.s32.totalorder %s243_s12, %s243_s12 }
  0x2c   :  { %174 = vmatpush3.bf16.msra.mxu0 %v189_v2  ;;  %p250_p5 = por %p249_p4, %p248_p3 }
  0x2e   :  { %p251_p6 = pnand %p250_p5, %p244_p2 }
  0x2f   :  { %176 = vmatmul.mubr.msk.bf16.vlgmr.msra.gmra.mrb[0].mxu0 %vm74_vm1, %v190_v3 }
 0x102   :  { %v112_v5 = vpop.f32.mrb[0].mxu0 }
 0x103   :  { %v113_v6 = vadd.f32 %v163_v4, %v112_v5  ;;  %v177_v7 = vpop.f32.mrb[1].mxu0 }
 0x104   :  { %v115_v8 = vpop.f32.mrb[2].mxu0 }
 0x105   :  { %v116_v9 = vadd.f32 %v163_v4, %v115_v8  ;;  %v178_v10 = vpop.f32.mrb[3].mxu0  ;;  %v119_v11 = vsel %vm74_vm1, %v113_v6, -inf }
 0x106   :  { %120 = vmax.xlane.f32.xlu0 %v119_v11 }
 0x107   :  { %v122_v12 = vsel %vm74_vm1, %v116_v9, -inf }
 0x10a   :  { %123 = vmax.xlane.f32.xlu0 %v122_v12 }
 0x193   :  { %v121_v13 = vpop.xlane.xlu0 %120 }
 0x194   :  { %v125_v14 = vsub.f32 %v113_v6, %v121_v13 }
 0x196   :  { %v127_v15 = vmul.f32 1.442695, %v125_v14 }
 0x197   :  { %v124_v16 = vpop.xlane.xlu0 %123 }
 0x198   :  { %191 = vpow2.f32 %v127_v15  ;;  %v126_v17 = vsub.f32 %v116_v9, %v124_v16 }
 0x19a   :  { %v129_v18 = vmul.f32 1.442695, %v126_v17 }
 0x19c   :  { %193 = vpow2.f32 %v129_v18 }
 0x1a2   :  { %v192_v19 = vpop.eup %191 }
 0x1a3   :  { %v131_v20 = vsel %vm74_vm1, %v192_v19, 0.0 }
 0x1a4   :  { %132 = vadd.xlane.f32.xlu1 %v131_v20 }
 0x1a6   :  { %v194_v21 = vpop.eup %193 }
 0x1a7   :  { %v134_v22 = vsel %vm74_vm1, %v194_v21, 0.0 }
 0x1a8   :  { %135 = vadd.xlane.f32.xlu1 %v134_v22 }
 0x231   :  { %v133_v23 = vpop.xlane.xlu1 %132 }
 0x232   :  { %195 = vlog2.f32 %v133_v23 }
 0x235   :  { %v136_v24 = vpop.xlane.xlu1 %135 }
 0x236   :  { %197 = vlog2.f32 %v136_v24 }
 0x23c   :  { %v196_v25 = vpop.eup %195 }
 0x23d   :  { %v138_v26 = vmul.f32 0.6931472, %v196_v25 }
 0x23f   :  { %v141_v27 = vsub.f32 %v125_v14, %v138_v26 }
 0x240   :  { %v198_v28 = vpop.eup %197 }
 0x241   :  { %143 = vst.msk [vmem:[#allocation7] sm:$0xff] %vm74_vm1, %v141_v27  ;;  %v140_v29 = vmul.f32 0.6931472, %v198_v28 }
 0x243   :  { %v142_v30 = vsub.f32 %v126_v17, %v140_v29 }
 0x245   :  { %144 = vst.msk [vmem:[#allocation7 + $0x8] sm:$0xff] %vm74_vm1, %v142_v30 }
 0x246   :  { %254 = shalt.err (!%p251_p6)
}
 0x247   :  { %s255_s15 = scalar_lea.hbm %s349_s3, 256 }
 0x248   :  { %p256_p7 = scmp.ne.s32.totalorder %s349_s3, %s255_s15  ;;  %p259_p8 = scmp.lt.u32.totalorder %s255_s15, %s349_s3 }
 0x24a   :  { %p261_p9 = pnand %p259_p8, %p256_p7 }
 0x24c   :  { %264 = shalt.err (!%p261_p9)
}
 0x24d   :  { %s278_s20 = smov 128   ;;  %s279_s21 = smov 8  }
 0x24e   :  { %156 = dma.vmem_to_hbm [thread:$0]  %s151_s2, 256, %s349_s3, [#allocation4], %s278_s20, %s278_s20, %s279_s21  }
 0x24f   :  { %269 = dma.done.wait [#allocation4], 256  }
 0x250   :  { %270 = vsyncadd [#allocation4], 4294967040 }
 0x251   :  { %160 = vsyncpa [#allocation3], 1 }
 0x252   :  { %161 = vsyncpa [#allocation6], 1 }
 0x253   :  { %162 = vsyncpa [#allocation4], 1 }

</bundles_post_ra>
